<compile_context>
chip_gen: v7x
topology: tpu7x:2x2x1
jax: 0.10.0
libtpu: 0.0.40
codegen_flags: <defaults>
</compile_context>

<pallas_src>
import functools

import jax
import jax.numpy as jnp
from jax.experimental import pallas as pl
from jax.experimental.pallas import tpu as pltpu


def _rope_kernel(dh, x_ref, ca_ref, cb_ref, o_ref):
    """out = deinterleave(x) * A + partner(deinterleave(x)) * B (all in VMEM)."""
    half = dh // 2
    x = x_ref[...].astype(jnp.float32)                        # (rows, L)
    L = x.shape[-1]
    lane = jax.lax.broadcasted_iota(jnp.int32, x.shape, 1)    # absolute lane index

    def swap_mid(v, b):
        # Swap the two middle b-wide blocks of every aligned (4b)-wide lane group.
        # Implemented as a masked sum of the two opposite cyclic rolls, so the
        # result is independent of pltpu.roll's shift-direction convention.
        u = lane % (4 * b)
        mid = (u >= b) & (u < 3 * b)
        m = jnp.where(mid, v, 0.0)
        s = pltpu.roll(m, b, axis=1) + pltpu.roll(m, L - b, axis=1)
        return jnp.where(mid, s, v)

    # --- de-interleave each head: lane j <- x[2j] (j < half), x[2(j-half)+1] (j >= half)
    b = 1
    while b < half:
        x = swap_mid(x, b)
        b *= 2

    # --- partner fetch ("rotate half" within each head): lane j <-> lane j +/- half
    if L == dh:
        # one head per row: half-period roll (direction-free by symmetry)
        partner = pltpu.roll(x, half, axis=1)
    else:
        # two heads per 128-lane row: [A B C D] -> [B A D C] via tau . rho . tau,
        # each step direction-free (tau = middle-block swap, rho = half-row roll).
        partner = swap_mid(x, half)
        partner = pltpu.roll(partner, L // 2, axis=1)
        partner = swap_mid(partner, half)

    o_ref[...] = (x * ca_ref[...] + partner * cb_ref[...]).astype(o_ref.dtype)


def rope_pallas(x, theta):
    """x: (B, H, S, Dh); theta: (Dh//2,)  ->  (B, H, S, Dh), RoPE-rotated."""
    B, H, S, Dh = x.shape
    half = Dh // 2
    assert Dh % 2 == 0 and theta.shape == (half,)
    assert half & (half - 1) == 0, "head_dim must be a power of two"

    # ---- wrapper precompute (tiny, position-only): full-width cos/sin tables ----
    pos = jnp.arange(S, dtype=jnp.float32)[:, None]
    ang = pos * theta.astype(jnp.float32)[None, :]             # (S, half)
    cos, sin = jnp.cos(ang), jnp.sin(ang)
    coef_a = jnp.concatenate([cos, cos], axis=-1)              # multiplies deinterleaved x
    coef_b = jnp.concatenate([-sin, sin], axis=-1)             # multiplies its partner

    # ---- lane-dense packing: 2 heads of width 64 per 128-lane row ----
    M = B * H * S
    pack = 2 if (Dh == 64 and M % 2 == 0) else 1
    L = Dh * pack
    Mp = M // pack

    x_p = x.reshape(Mp, L)                                     # free row-major collapse
    ca = jnp.broadcast_to(coef_a[None], (B * H, S, Dh)).reshape(Mp, L)
    cb = jnp.broadcast_to(coef_b[None], (B * H, S, Dh)).reshape(Mp, L)

    # Single grid step at these sizes; tile rows only if the problem is large.
    blk = Mp
    if Mp > 1024:
        for cand in (1024, 512, 256, 128, 64, 32, 16, 8):
            if Mp % cand == 0:
                blk = cand
                break
    grid = (Mp // blk,)
    spec = pl.BlockSpec((blk, L), lambda i: (i, 0))

    out_p = pl.pallas_call(
        functools.partial(_rope_kernel, Dh),
        out_shape=jax.ShapeDtypeStruct((Mp, L), x.dtype),
        grid=grid,
        in_specs=[spec, spec, spec],
        out_specs=spec,
        compiler_params=pltpu.CompilerParams(
            dimension_semantics=("parallel",),
        ),
    )(x_p, ca, cb)

    return out_p.reshape(B, H, S, Dh)


def rope_ref(x, theta):
    """Pure-JAX mirror of the PyTorch reference (correctness check only)."""
    S = x.shape[2]
    pos = jnp.arange(S, dtype=jnp.float32)[:, None]
    ang = pos * theta.astype(jnp.float32)[None, :]
    cos = jnp.cos(ang)[None, None]
    sin = jnp.sin(ang)[None, None]
    x1, x2 = x[..., 0::2], x[..., 1::2]
    return jnp.concatenate([-x2 * sin + x1 * cos, x1 * sin + x2 * cos], axis=-1)


if __name__ == "__main__":
    key = jax.random.PRNGKey(0)
    kx, _ = jax.random.split(key)
    B, H, S, Dh = 2, 5, 8, 64          # DeepSeekMoE attention config: n_heads=5, head_dim=64
    x = jax.random.normal(kx, (B, H, S, Dh), dtype=jnp.float32)
    theta = 1.0 / (10000.0 ** (jnp.arange(0, Dh, 2, dtype=jnp.float32) / Dh))  # (Dh//2,)

    out = jax.block_until_ready(jax.jit(rope_pallas)(x, theta))
    ref = rope_ref(x, theta)

    assert out.shape == (B, H, S, Dh)
    assert bool(jnp.all(jnp.isfinite(out)))
    err = float(jnp.max(jnp.abs(out - ref)))
    assert err < 1e-5, f"max abs error vs reference: {err}"
    print("KERNEL_OK")
</pallas_src>

<mosaic_0001>
module attributes {stable_mosaic.version = 11 : i64} {
  func.func @_rope_kernel(%arg0: i32, %arg1: memref<40x128xf32, #tpu.memory_space<vmem>>, %arg2: memref<40x128xf32, #tpu.memory_space<vmem>>, %arg3: memref<40x128xf32, #tpu.memory_space<vmem>>, %arg4: memref<40x128xf32, #tpu.memory_space<vmem>>) attributes {dimension_semantics = [#tpu.dimension_semantics<parallel>], iteration_bounds = array<i64: 1>, scalar_prefetch = 0 : i64, scratch_operands = 0 : i64, tpu.core_type = #tpu.core_type<tc>, window_params = [{transform_indices = @transform_0, window_bounds = array<i64: 40, 128>}, {transform_indices = @transform_1, window_bounds = array<i64: 40, 128>}, {transform_indices = @transform_2, window_bounds = array<i64: 40, 128>}, {transform_indices = @transform_3, window_bounds = array<i64: 40, 128>}]} {
    %c0 = arith.constant 0 : index
    %c0_0 = arith.constant 0 : index
    %0 = vector.load %arg1[%c0, %c0_0] : memref<40x128xf32, #tpu.memory_space<vmem>>, vector<40x128xf32>
    %1 = tpu.iota {dimensions = array<i32: 1>} : vector<40x128xi32>
    %c4_i32 = arith.constant 4 : i32
    %c0_i32 = arith.constant 0 : i32
    %2 = arith.cmpi eq, %c4_i32, %c0_i32 : i32
    %c1_i32 = arith.constant 1 : i32
    %3 = arith.select %2, %c1_i32, %c4_i32 : i32
    %4 = vector.broadcast %3 : i32 to vector<40x128xi32>
    %5 = arith.remsi %1, %4 : vector<40x128xi32>
    %c0_i32_1 = arith.constant 0 : i32
    %6 = vector.broadcast %c0_i32_1 : i32 to vector<40x128xi32>
    %7 = arith.cmpi ne, %5, %6 : vector<40x128xi32>
    %c0_i32_2 = arith.constant 0 : i32
    %8 = vector.broadcast %c0_i32_2 : i32 to vector<40x128xi32>
    %9 = arith.cmpi slt, %5, %8 : vector<40x128xi32>
    %c0_i32_3 = arith.constant 0 : i32
    %10 = arith.cmpi slt, %3, %c0_i32_3 : i32
    %11 = vector.broadcast %10 : i1 to vector<40x128xi1>
    %12 = vector.broadcast %11 : vector<40x128xi1> to vector<40x128xi1>
    %13 = arith.xori %9, %12 : vector<40x128xi1>
    %14 = arith.andi %13, %7 : vector<40x128xi1>
    %15 = vector.broadcast %3 : i32 to vector<40x128xi32>
    %16 = arith.addi %5, %15 : vector<40x128xi32>
    %17 = arith.select %14, %16, %5 : vector<40x128xi1>, vector<40x128xi32>
    %c1_i32_4 = arith.constant 1 : i32
    %18 = vector.broadcast %c1_i32_4 : i32 to vector<40x128xi32>
    %19 = arith.cmpi sge, %17, %18 : vector<40x128xi32>
    %c3_i32 = arith.constant 3 : i32
    %20 = vector.broadcast %c3_i32 : i32 to vector<40x128xi32>
    %21 = arith.cmpi slt, %17, %20 : vector<40x128xi32>
    %22 = arith.andi %19, %21 : vector<40x128xi1>
    %cst = arith.constant 0.000000e+00 : f32
    %23 = vector.broadcast %cst : f32 to vector<40x128xf32>
    %24 = arith.select %22, %0, %23 : vector<40x128xi1>, vector<40x128xf32>
    %c1_i32_5 = arith.constant 1 : i32
    %25 = tpu.dynamic_rotate %24 by %c1_i32_5 dim 1 : vector<40x128xf32>, i32 -> vector<40x128xf32>
    %c127_i32 = arith.constant 127 : i32
    %26 = tpu.dynamic_rotate %24 by %c127_i32 dim 1 : vector<40x128xf32>, i32 -> vector<40x128xf32>
    %27 = arith.addf %25, %26 : vector<40x128xf32>
    %28 = arith.select %22, %27, %0 : vector<40x128xi1>, vector<40x128xf32>
    %c8_i32 = arith.constant 8 : i32
    %c0_i32_6 = arith.constant 0 : i32
    %29 = arith.cmpi eq, %c8_i32, %c0_i32_6 : i32
    %c1_i32_7 = arith.constant 1 : i32
    %30 = arith.select %29, %c1_i32_7, %c8_i32 : i32
    %31 = vector.broadcast %30 : i32 to vector<40x128xi32>
    %32 = arith.remsi %1, %31 : vector<40x128xi32>
    %c0_i32_8 = arith.constant 0 : i32
    %33 = vector.broadcast %c0_i32_8 : i32 to vector<40x128xi32>
    %34 = arith.cmpi ne, %32, %33 : vector<40x128xi32>
    %c0_i32_9 = arith.constant 0 : i32
    %35 = vector.broadcast %c0_i32_9 : i32 to vector<40x128xi32>
    %36 = arith.cmpi slt, %32, %35 : vector<40x128xi32>
    %c0_i32_10 = arith.constant 0 : i32
    %37 = arith.cmpi slt, %30, %c0_i32_10 : i32
    %38 = vector.broadcast %37 : i1 to vector<40x128xi1>
    %39 = vector.broadcast %38 : vector<40x128xi1> to vector<40x128xi1>
    %40 = arith.xori %36, %39 : vector<40x128xi1>
    %41 = arith.andi %40, %34 : vector<40x128xi1>
    %42 = vector.broadcast %30 : i32 to vector<40x128xi32>
    %43 = arith.addi %32, %42 : vector<40x128xi32>
    %44 = arith.select %41, %43, %32 : vector<40x128xi1>, vector<40x128xi32>
    %c2_i32 = arith.constant 2 : i32
    %45 = vector.broadcast %c2_i32 : i32 to vector<40x128xi32>
    %46 = arith.cmpi sge, %44, %45 : vector<40x128xi32>
    %c6_i32 = arith.constant 6 : i32
    %47 = vector.broadcast %c6_i32 : i32 to vector<40x128xi32>
    %48 = arith.cmpi slt, %44, %47 : vector<40x128xi32>
    %49 = arith.andi %46, %48 : vector<40x128xi1>
    %cst_11 = arith.constant 0.000000e+00 : f32
    %50 = vector.broadcast %cst_11 : f32 to vector<40x128xf32>
    %51 = arith.select %49, %28, %50 : vector<40x128xi1>, vector<40x128xf32>
    %c2_i32_12 = arith.constant 2 : i32
    %52 = tpu.dynamic_rotate %51 by %c2_i32_12 dim 1 : vector<40x128xf32>, i32 -> vector<40x128xf32>
    %c126_i32 = arith.constant 126 : i32
    %53 = tpu.dynamic_rotate %51 by %c126_i32 dim 1 : vector<40x128xf32>, i32 -> vector<40x128xf32>
    %54 = arith.addf %52, %53 : vector<40x128xf32>
    %55 = arith.select %49, %54, %28 : vector<40x128xi1>, vector<40x128xf32>
    %c16_i32 = arith.constant 16 : i32
    %c0_i32_13 = arith.constant 0 : i32
    %56 = arith.cmpi eq, %c16_i32, %c0_i32_13 : i32
    %c1_i32_14 = arith.constant 1 : i32
    %57 = arith.select %56, %c1_i32_14, %c16_i32 : i32
    %58 = vector.broadcast %57 : i32 to vector<40x128xi32>
    %59 = arith.remsi %1, %58 : vector<40x128xi32>
    %c0_i32_15 = arith.constant 0 : i32
    %60 = vector.broadcast %c0_i32_15 : i32 to vector<40x128xi32>
    %61 = arith.cmpi ne, %59, %60 : vector<40x128xi32>
    %c0_i32_16 = arith.constant 0 : i32
    %62 = vector.broadcast %c0_i32_16 : i32 to vector<40x128xi32>
    %63 = arith.cmpi slt, %59, %62 : vector<40x128xi32>
    %c0_i32_17 = arith.constant 0 : i32
    %64 = arith.cmpi slt, %57, %c0_i32_17 : i32
    %65 = vector.broadcast %64 : i1 to vector<40x128xi1>
    %66 = vector.broadcast %65 : vector<40x128xi1> to vector<40x128xi1>
    %67 = arith.xori %63, %66 : vector<40x128xi1>
    %68 = arith.andi %67, %61 : vector<40x128xi1>
    %69 = vector.broadcast %57 : i32 to vector<40x128xi32>
    %70 = arith.addi %59, %69 : vector<40x128xi32>
    %71 = arith.select %68, %70, %59 : vector<40x128xi1>, vector<40x128xi32>
    %c4_i32_18 = arith.constant 4 : i32
    %72 = vector.broadcast %c4_i32_18 : i32 to vector<40x128xi32>
    %73 = arith.cmpi sge, %71, %72 : vector<40x128xi32>
    %c12_i32 = arith.constant 12 : i32
    %74 = vector.broadcast %c12_i32 : i32 to vector<40x128xi32>
    %75 = arith.cmpi slt, %71, %74 : vector<40x128xi32>
    %76 = arith.andi %73, %75 : vector<40x128xi1>
    %cst_19 = arith.constant 0.000000e+00 : f32
    %77 = vector.broadcast %cst_19 : f32 to vector<40x128xf32>
    %78 = arith.select %76, %55, %77 : vector<40x128xi1>, vector<40x128xf32>
    %c4_i32_20 = arith.constant 4 : i32
    %79 = tpu.dynamic_rotate %78 by %c4_i32_20 dim 1 : vector<40x128xf32>, i32 -> vector<40x128xf32>
    %c124_i32 = arith.constant 124 : i32
    %80 = tpu.dynamic_rotate %78 by %c124_i32 dim 1 : vector<40x128xf32>, i32 -> vector<40x128xf32>
    %81 = arith.addf %79, %80 : vector<40x128xf32>
    %82 = arith.select %76, %81, %55 : vector<40x128xi1>, vector<40x128xf32>
    %c32_i32 = arith.constant 32 : i32
    %c0_i32_21 = arith.constant 0 : i32
    %83 = arith.cmpi eq, %c32_i32, %c0_i32_21 : i32
    %c1_i32_22 = arith.constant 1 : i32
    %84 = arith.select %83, %c1_i32_22, %c32_i32 : i32
    %85 = vector.broadcast %84 : i32 to vector<40x128xi32>
    %86 = arith.remsi %1, %85 : vector<40x128xi32>
    %c0_i32_23 = arith.constant 0 : i32
    %87 = vector.broadcast %c0_i32_23 : i32 to vector<40x128xi32>
    %88 = arith.cmpi ne, %86, %87 : vector<40x128xi32>
    %c0_i32_24 = arith.constant 0 : i32
    %89 = vector.broadcast %c0_i32_24 : i32 to vector<40x128xi32>
    %90 = arith.cmpi slt, %86, %89 : vector<40x128xi32>
    %c0_i32_25 = arith.constant 0 : i32
    %91 = arith.cmpi slt, %84, %c0_i32_25 : i32
    %92 = vector.broadcast %91 : i1 to vector<40x128xi1>
    %93 = vector.broadcast %92 : vector<40x128xi1> to vector<40x128xi1>
    %94 = arith.xori %90, %93 : vector<40x128xi1>
    %95 = arith.andi %94, %88 : vector<40x128xi1>
    %96 = vector.broadcast %84 : i32 to vector<40x128xi32>
    %97 = arith.addi %86, %96 : vector<40x128xi32>
    %98 = arith.select %95, %97, %86 : vector<40x128xi1>, vector<40x128xi32>
    %c8_i32_26 = arith.constant 8 : i32
    %99 = vector.broadcast %c8_i32_26 : i32 to vector<40x128xi32>
    %100 = arith.cmpi sge, %98, %99 : vector<40x128xi32>
    %c24_i32 = arith.constant 24 : i32
    %101 = vector.broadcast %c24_i32 : i32 to vector<40x128xi32>
    %102 = arith.cmpi slt, %98, %101 : vector<40x128xi32>
    %103 = arith.andi %100, %102 : vector<40x128xi1>
    %cst_27 = arith.constant 0.000000e+00 : f32
    %104 = vector.broadcast %cst_27 : f32 to vector<40x128xf32>
    %105 = arith.select %103, %82, %104 : vector<40x128xi1>, vector<40x128xf32>
    %c8_i32_28 = arith.constant 8 : i32
    %106 = tpu.dynamic_rotate %105 by %c8_i32_28 dim 1 : vector<40x128xf32>, i32 -> vector<40x128xf32>
    %c120_i32 = arith.constant 120 : i32
    %107 = tpu.dynamic_rotate %105 by %c120_i32 dim 1 : vector<40x128xf32>, i32 -> vector<40x128xf32>
    %108 = arith.addf %106, %107 : vector<40x128xf32>
    %109 = arith.select %103, %108, %82 : vector<40x128xi1>, vector<40x128xf32>
    %c64_i32 = arith.constant 64 : i32
    %c0_i32_29 = arith.constant 0 : i32
    %110 = arith.cmpi eq, %c64_i32, %c0_i32_29 : i32
    %c1_i32_30 = arith.constant 1 : i32
    %111 = arith.select %110, %c1_i32_30, %c64_i32 : i32
    %112 = vector.broadcast %111 : i32 to vector<40x128xi32>
    %113 = arith.remsi %1, %112 : vector<40x128xi32>
    %c0_i32_31 = arith.constant 0 : i32
    %114 = vector.broadcast %c0_i32_31 : i32 to vector<40x128xi32>
    %115 = arith.cmpi ne, %113, %114 : vector<40x128xi32>
    %c0_i32_32 = arith.constant 0 : i32
    %116 = vector.broadcast %c0_i32_32 : i32 to vector<40x128xi32>
    %117 = arith.cmpi slt, %113, %116 : vector<40x128xi32>
    %c0_i32_33 = arith.constant 0 : i32
    %118 = arith.cmpi slt, %111, %c0_i32_33 : i32
    %119 = vector.broadcast %118 : i1 to vector<40x128xi1>
    %120 = vector.broadcast %119 : vector<40x128xi1> to vector<40x128xi1>
    %121 = arith.xori %117, %120 : vector<40x128xi1>
    %122 = arith.andi %121, %115 : vector<40x128xi1>
    %123 = vector.broadcast %111 : i32 to vector<40x128xi32>
    %124 = arith.addi %113, %123 : vector<40x128xi32>
    %125 = arith.select %122, %124, %113 : vector<40x128xi1>, vector<40x128xi32>
    %c16_i32_34 = arith.constant 16 : i32
    %126 = vector.broadcast %c16_i32_34 : i32 to vector<40x128xi32>
    %127 = arith.cmpi sge, %125, %126 : vector<40x128xi32>
    %c48_i32 = arith.constant 48 : i32
    %128 = vector.broadcast %c48_i32 : i32 to vector<40x128xi32>
    %129 = arith.cmpi slt, %125, %128 : vector<40x128xi32>
    %130 = arith.andi %127, %129 : vector<40x128xi1>
    %cst_35 = arith.constant 0.000000e+00 : f32
    %131 = vector.broadcast %cst_35 : f32 to vector<40x128xf32>
    %132 = arith.select %130, %109, %131 : vector<40x128xi1>, vector<40x128xf32>
    %c16_i32_36 = arith.constant 16 : i32
    %133 = tpu.dynamic_rotate %132 by %c16_i32_36 dim 1 : vector<40x128xf32>, i32 -> vector<40x128xf32>
    %c112_i32 = arith.constant 112 : i32
    %134 = tpu.dynamic_rotate %132 by %c112_i32 dim 1 : vector<40x128xf32>, i32 -> vector<40x128xf32>
    %135 = arith.addf %133, %134 : vector<40x128xf32>
    %136 = arith.select %130, %135, %109 : vector<40x128xi1>, vector<40x128xf32>
    %c128_i32 = arith.constant 128 : i32
    %c0_i32_37 = arith.constant 0 : i32
    %137 = arith.cmpi eq, %c128_i32, %c0_i32_37 : i32
    %c1_i32_38 = arith.constant 1 : i32
    %138 = arith.select %137, %c1_i32_38, %c128_i32 : i32
    %139 = vector.broadcast %138 : i32 to vector<40x128xi32>
    %140 = arith.remsi %1, %139 : vector<40x128xi32>
    %c0_i32_39 = arith.constant 0 : i32
    %141 = vector.broadcast %c0_i32_39 : i32 to vector<40x128xi32>
    %142 = arith.cmpi ne, %140, %141 : vector<40x128xi32>
    %c0_i32_40 = arith.constant 0 : i32
    %143 = vector.broadcast %c0_i32_40 : i32 to vector<40x128xi32>
    %144 = arith.cmpi slt, %140, %143 : vector<40x128xi32>
    %c0_i32_41 = arith.constant 0 : i32
    %145 = arith.cmpi slt, %138, %c0_i32_41 : i32
    %146 = vector.broadcast %145 : i1 to vector<40x128xi1>
    %147 = vector.broadcast %146 : vector<40x128xi1> to vector<40x128xi1>
    %148 = arith.xori %144, %147 : vector<40x128xi1>
    %149 = arith.andi %148, %142 : vector<40x128xi1>
    %150 = vector.broadcast %138 : i32 to vector<40x128xi32>
    %151 = arith.addi %140, %150 : vector<40x128xi32>
    %152 = arith.select %149, %151, %140 : vector<40x128xi1>, vector<40x128xi32>
    %c32_i32_42 = arith.constant 32 : i32
    %153 = vector.broadcast %c32_i32_42 : i32 to vector<40x128xi32>
    %154 = arith.cmpi sge, %152, %153 : vector<40x128xi32>
    %c96_i32 = arith.constant 96 : i32
    %155 = vector.broadcast %c96_i32 : i32 to vector<40x128xi32>
    %156 = arith.cmpi slt, %152, %155 : vector<40x128xi32>
    %157 = arith.andi %154, %156 : vector<40x128xi1>
    %cst_43 = arith.constant 0.000000e+00 : f32
    %158 = vector.broadcast %cst_43 : f32 to vector<40x128xf32>
    %159 = arith.select %157, %136, %158 : vector<40x128xi1>, vector<40x128xf32>
    %c32_i32_44 = arith.constant 32 : i32
    %160 = tpu.dynamic_rotate %159 by %c32_i32_44 dim 1 : vector<40x128xf32>, i32 -> vector<40x128xf32>
    %c96_i32_45 = arith.constant 96 : i32
    %161 = tpu.dynamic_rotate %159 by %c96_i32_45 dim 1 : vector<40x128xf32>, i32 -> vector<40x128xf32>
    %162 = arith.addf %160, %161 : vector<40x128xf32>
    %163 = arith.select %157, %162, %136 : vector<40x128xi1>, vector<40x128xf32>
    %c64_i32_46 = arith.constant 64 : i32
    %164 = tpu.dynamic_rotate %163 by %c64_i32_46 dim 1 : vector<40x128xf32>, i32 -> vector<40x128xf32>
    %c128_i32_47 = arith.constant 128 : i32
    %c0_i32_48 = arith.constant 0 : i32
    %165 = arith.cmpi eq, %c128_i32_47, %c0_i32_48 : i32
    %c1_i32_49 = arith.constant 1 : i32
    %166 = arith.select %165, %c1_i32_49, %c128_i32_47 : i32
    %167 = vector.broadcast %166 : i32 to vector<40x128xi32>
    %168 = arith.remsi %1, %167 : vector<40x128xi32>
    %c0_i32_50 = arith.constant 0 : i32
    %169 = vector.broadcast %c0_i32_50 : i32 to vector<40x128xi32>
    %170 = arith.cmpi ne, %168, %169 : vector<40x128xi32>
    %c0_i32_51 = arith.constant 0 : i32
    %171 = vector.broadcast %c0_i32_51 : i32 to vector<40x128xi32>
    %172 = arith.cmpi slt, %168, %171 : vector<40x128xi32>
    %c0_i32_52 = arith.constant 0 : i32
    %173 = arith.cmpi slt, %166, %c0_i32_52 : i32
    %174 = vector.broadcast %173 : i1 to vector<40x128xi1>
    %175 = vector.broadcast %174 : vector<40x128xi1> to vector<40x128xi1>
    %176 = arith.xori %172, %175 : vector<40x128xi1>
    %177 = arith.andi %176, %170 : vector<40x128xi1>
    %178 = vector.broadcast %166 : i32 to vector<40x128xi32>
    %179 = arith.addi %168, %178 : vector<40x128xi32>
    %180 = arith.select %177, %179, %168 : vector<40x128xi1>, vector<40x128xi32>
    %c32_i32_53 = arith.constant 32 : i32
    %181 = vector.broadcast %c32_i32_53 : i32 to vector<40x128xi32>
    %182 = arith.cmpi sge, %180, %181 : vector<40x128xi32>
    %c96_i32_54 = arith.constant 96 : i32
    %183 = vector.broadcast %c96_i32_54 : i32 to vector<40x128xi32>
    %184 = arith.cmpi slt, %180, %183 : vector<40x128xi32>
    %185 = arith.andi %182, %184 : vector<40x128xi1>
    %cst_55 = arith.constant 0.000000e+00 : f32
    %186 = vector.broadcast %cst_55 : f32 to vector<40x128xf32>
    %187 = arith.select %185, %164, %186 : vector<40x128xi1>, vector<40x128xf32>
    %c32_i32_56 = arith.constant 32 : i32
    %188 = tpu.dynamic_rotate %187 by %c32_i32_56 dim 1 : vector<40x128xf32>, i32 -> vector<40x128xf32>
    %c96_i32_57 = arith.constant 96 : i32
    %189 = tpu.dynamic_rotate %187 by %c96_i32_57 dim 1 : vector<40x128xf32>, i32 -> vector<40x128xf32>
    %190 = arith.addf %188, %189 : vector<40x128xf32>
    %191 = arith.select %185, %190, %164 : vector<40x128xi1>, vector<40x128xf32>
    %c0_58 = arith.constant 0 : index
    %c0_59 = arith.constant 0 : index
    %192 = vector.load %arg2[%c0_58, %c0_59] : memref<40x128xf32, #tpu.memory_space<vmem>>, vector<40x128xf32>
    %193 = arith.mulf %136, %192 : vector<40x128xf32>
    %c0_60 = arith.constant 0 : index
    %c0_61 = arith.constant 0 : index
    %194 = vector.load %arg3[%c0_60, %c0_61] : memref<40x128xf32, #tpu.memory_space<vmem>>, vector<40x128xf32>
    %195 = arith.mulf %191, %194 : vector<40x128xf32>
    %196 = arith.addf %193, %195 : vector<40x128xf32>
    %c0_62 = arith.constant 0 : index
    %c0_63 = arith.constant 0 : index
    %197 = vector.load %arg4[%c0_62, %c0_63] : memref<40x128xf32, #tpu.memory_space<vmem>>, vector<40x128xf32>
    tpu.vector_store %arg4[%c0_62, %c0_63], %196 {strides = array<i32>} : memref<40x128xf32, #tpu.memory_space<vmem>>, vector<40x128xf32>,
    return
  }
  func.func @transform_0(%arg0: i32) -> (i32, i32) {
    %c0_i32 = arith.constant 0 : i32
    %c0_i32_0 = arith.constant 0 : i32
    return %arg0, %c0_i32 : i32, i32
  }
  func.func @transform_1(%arg0: i32) -> (i32, i32) {
    %c0_i32 = arith.constant 0 : i32
    %c0_i32_0 = arith.constant 0 : i32
    return %arg0, %c0_i32 : i32, i32
  }
  func.func @transform_2(%arg0: i32) -> (i32, i32) {
    %c0_i32 = arith.constant 0 : i32
    %c0_i32_0 = arith.constant 0 : i32
    return %arg0, %c0_i32 : i32, i32
  }
  func.func @transform_3(%arg0: i32) -> (i32, i32) {
    %c0_i32 = arith.constant 0 : i32
    %c0_i32_0 = arith.constant 0 : i32
    return %arg0, %c0_i32 : i32, i32
  }
}

</mosaic_0001>

<bundles_post_ra>
// kernel: rope_pallas.1
= control target key start
LH: loop header
LB: loop body
LE: loop exit
PB: predicated region body
PF: predicated region fallthrough
CT: control target
= control target key end

     0   :  { %v19_v0 = vlaneseq  ;;  %s413_s20 = smov 1   ;;  %s414_s23 = smov 127   ;;  %s724_s0 = inlined_call_operand.vmem [shape: f32[40,128], index: 0, kind: input, shape index: {}]   ;;  %s725_s1 = inlined_call_operand.vmem [shape: f32[40,128], index: 1, kind: input, shape index: {}]   ;;  %s726_s2 = inlined_call_operand.vmem [shape: f32[40,128], index: 2, kind: input, shape index: {}]   ;;  %s727_s3 = inlined_call_operand.vmem [shape: f32[40,128], index: 3, kind: output, shape index: {}]  }
   0x1   :  { %v16_v3 = vld [vmem:[%s724_s0 + $0x10] sm:$0xff]  ;;  %v14_v4 = vld [vmem:[%s724_s0] sm:$0xff]  ;;  %v17_v6 = vld [vmem:[%s724_s0 + $0x18] sm:$0xff]  ;;  %s416_s24 = smov 126   ;;  %s417_s25 = smov 4  }
   0x2   :  { %v446_v1 = vand.u32 127, %v19_v0  ;;  %v15_v7 = vld [vmem:[%s724_s0 + $0x8] sm:$0xff]  ;;  %v18_v12 = vld [vmem:[%s724_s0 + $0x20] sm:$0xff]  ;;  %s415_s0 = smov 2   ;;  %s418_s26 = smov 124  }
   0x3   :  { %s419_s27 = smov 8   ;;  %s420_s28 = smov 120  }
   0x4   :  { %v25_v2 = vand.u32 3, %v446_v1  ;;  %v75_v16 = vand.u32 7, %v446_v1  ;;  %v125_v44 = vand.u32 15, %v446_v1  ;;  %s421_s29 = smov 16   ;;  %s422_s30 = smov 112   ;;  %vm283_vm15 = vcmp.ge.s32.totalorder %v446_v1, 32 }
   0x5   :  { %s423_s4 = smov 32   ;;  %s424_s5 = smov 96  }
   0x6   :  { %vm33_vm0 = vcmp.ge.s32.totalorder %v25_v2, 1  ;;  %vm34_vm1 = vcmp.lt.s32.totalorder %v25_v2, 3  ;;  %vm83_vm3 = vcmp.ge.s32.totalorder %v75_v16, 2  ;;  %vm84_vm4 = vcmp.lt.s32.totalorder %v75_v16, 6  ;;  %s425_s6 = smov 64  }
   0x7   :  { %vm455_vm2 = vmand %vm33_vm0, %vm34_vm1  ;;  %vm133_vm6 = vcmp.ge.s32.totalorder %v125_v44, 4  ;;  %vm134_vm7 = vcmp.lt.s32.totalorder %v125_v44, 12  ;;  %vm284_vm0 = vcmp.lt.s32.totalorder %v446_v1, 96 }
   0x8   :  { %v38_v8 = vsel %vm455_vm2, %v16_v3, 0.0  ;;  %v36_v9 = vsel %vm455_vm2, %v14_v4, 0.0  ;;  %v39_v10 = vsel %vm455_vm2, %v17_v6, 0.0  ;;  %v37_v11 = vsel %vm455_vm2, %v15_v7, 0.0  ;;  %vm479_vm5 = vmand %vm83_vm3, %vm84_vm4 }
   0x9   :  { %45 = vrot.lane.b32.xlu1 %v38_v8, %s413_s20  ;;  %41 = vrot.lane.b32.xlu0 %v36_v9, %s413_s20  ;;  %v40_v13 = vsel %vm455_vm2, %v18_v12, 0.0  ;;  %vm504_vm8 = vmand %vm133_vm6, %vm134_vm7 }
   0xa   :  { %vm580_vm1 = vmand %vm283_vm15, %vm284_vm0 }
   0xd   :  { %47 = vrot.lane.b32.xlu1 %v39_v10, %s413_s20  ;;  %43 = vrot.lane.b32.xlu0 %v37_v11, %s413_s20 }
  0x11   :  { %51 = vrot.lane.b32.xlu1 %v36_v9, %s414_s23  ;;  %49 = vrot.lane.b32.xlu0 %v40_v13, %s413_s20 }
  0x15   :  { %55 = vrot.lane.b32.xlu1 %v38_v8, %s414_s23  ;;  %53 = vrot.lane.b32.xlu0 %v37_v11, %s414_s23 }
  0x19   :  { %59 = vrot.lane.b32.xlu1 %v40_v13, %s414_s23  ;;  %57 = vrot.lane.b32.xlu0 %v39_v10, %s414_s23 }
  0x7b   :  { %v46_v14 = vpop.permute.xlu1 %45  ;;  %v42_v15 = vpop.permute.xlu0 %41 }
  0x7f   :  { %v48_v17 = vpop.permute.xlu1 %47  ;;  %v44_v18 = vpop.permute.xlu0 %43 }
  0x83   :  { %v52_v19 = vpop.permute.xlu1 %51  ;;  %v50_v20 = vpop.permute.xlu0 %49 }
  0x84   :  { %v61_v21 = vadd.f32 %v52_v19, %v42_v15 }
  0x86   :  { %v66_v23 = vsel %vm455_vm2, %v61_v21, %v14_v4 }
  0x87   :  { %v56_v24 = vpop.permute.xlu1 %55  ;;  %v54_v25 = vpop.permute.xlu0 %53  ;;  %v86_v26 = vsel %vm479_vm5, %v66_v23, 0.0 }
  0x88   :  { %v63_v27 = vadd.f32 %v56_v24, %v46_v14  ;;  %v62_v28 = vadd.f32 %v54_v25, %v44_v18  ;;  %91 = vrot.lane.b32.xlu0 %v86_v26, %s415_s0 }
  0x8a   :  { %v68_v29 = vsel %vm455_vm2, %v63_v27, %v16_v3  ;;  %v67_v30 = vsel %vm455_vm2, %v62_v28, %v15_v7  ;;  %v175_v7 = vand.u32 31, %v446_v1 }
  0x8b   :  { %v60_v31 = vpop.permute.xlu1 %59  ;;  %v58_v32 = vpop.permute.xlu0 %57  ;;  %v88_v33 = vsel %vm479_vm5, %v68_v29, 0.0  ;;  %v87_v34 = vsel %vm479_vm5, %v67_v30, 0.0 }
  0x8c   :  { %v65_v35 = vadd.f32 %v60_v31, %v50_v20  ;;  %v64_v36 = vadd.f32 %v58_v32, %v48_v17  ;;  %95 = vrot.lane.b32.xlu0 %v88_v33, %s415_s0  ;;  %93 = vrot.lane.b32.xlu1 %v87_v34, %s415_s0  ;;  %vm183_vm9 = vcmp.ge.s32.totalorder %v175_v7, 8  ;;  %vm184_vm10 = vcmp.lt.s32.totalorder %v175_v7, 24 }
  0x8d   :  { %vm529_vm11 = vmand %vm183_vm9, %vm184_vm10 }
  0x8e   :  { %v70_v37 = vsel %vm455_vm2, %v65_v35, %v18_v12  ;;  %v69_v38 = vsel %vm455_vm2, %v64_v36, %v17_v6  ;;  %v225_v35 = vand.u32 63, %v446_v1 }
  0x8f   :  { %v90_v39 = vsel %vm479_vm5, %v70_v37, 0.0  ;;  %v89_v40 = vsel %vm479_vm5, %v69_v38, 0.0 }
  0x90   :  { %99 = vrot.lane.b32.xlu0 %v90_v39, %s415_s0  ;;  %97 = vrot.lane.b32.xlu1 %v89_v40, %s415_s0  ;;  %vm233_vm12 = vcmp.ge.s32.totalorder %v225_v35, 16  ;;  %vm234_vm13 = vcmp.lt.s32.totalorder %v225_v35, 48 }
  0x91   :  { %vm554_vm14 = vmand %vm233_vm12, %vm234_vm13 }
  0x94   :  { %103 = vrot.lane.b32.xlu0 %v87_v34, %s416_s24  ;;  %101 = vrot.lane.b32.xlu1 %v86_v26, %s416_s24 }
  0x98   :  { %107 = vrot.lane.b32.xlu0 %v89_v40, %s416_s24  ;;  %105 = vrot.lane.b32.xlu1 %v88_v33, %s416_s24 }
  0x9c   :  { %109 = vrot.lane.b32.xlu1 %v90_v39, %s416_s24 }
  0xfa   :  { %v92_v41 = vpop.permute.xlu0 %91 }
  0xfe   :  { %v94_v42 = vpop.permute.xlu1 %93  ;;  %v96_v43 = vpop.permute.xlu0 %95 }
 0x102   :  { %v98_v45 = vpop.permute.xlu1 %97  ;;  %v100_v46 = vpop.permute.xlu0 %99 }
 0x106   :  { %v102_v47 = vpop.permute.xlu1 %101  ;;  %v104_v48 = vpop.permute.xlu0 %103 }
 0x107   :  { %v111_v49 = vadd.f32 %v102_v47, %v92_v41  ;;  %v112_v50 = vadd.f32 %v104_v48, %v94_v42 }
 0x109   :  { %v116_v52 = vsel %vm479_vm5, %v111_v49, %v66_v23  ;;  %v117_v53 = vsel %vm479_vm5, %v112_v50, %v67_v30 }
 0x10a   :  { %v106_v54 = vpop.permute.xlu1 %105  ;;  %v108_v55 = vpop.permute.xlu0 %107  ;;  %v136_v56 = vsel %vm504_vm8, %v116_v52, 0.0  ;;  %v137_v57 = vsel %vm504_vm8, %v117_v53, 0.0 }
 0x10b   :  { %v113_v58 = vadd.f32 %v106_v54, %v96_v43  ;;  %v114_v59 = vadd.f32 %v108_v55, %v98_v45  ;;  %141 = vrot.lane.b32.xlu0 %v136_v56, %s417_s25  ;;  %143 = vrot.lane.b32.xlu1 %v137_v57, %s417_s25 }
 0x10d   :  { %v118_v60 = vsel %vm479_vm5, %v113_v58, %v68_v29  ;;  %v119_v61 = vsel %vm479_vm5, %v114_v59, %v69_v38 }
 0x10e   :  { %v110_v62 = vpop.permute.xlu1 %109  ;;  %v138_v63 = vsel %vm504_vm8, %v118_v60, 0.0  ;;  %v139_v0 = vsel %vm504_vm8, %v119_v61, 0.0 }
 0x10f   :  { %v115_v2 = vadd.f32 %v110_v62, %v100_v46  ;;  %145 = vrot.lane.b32.xlu0 %v138_v63, %s417_s25  ;;  %147 = vrot.lane.b32.xlu1 %v139_v0, %s417_s25 }
 0x111   :  { %v120_v3 = vsel %vm479_vm5, %v115_v2, %v70_v37 }
 0x112   :  { %v140_v4 = vsel %vm504_vm8, %v120_v3, 0.0 }
 0x113   :  { %149 = vrot.lane.b32.xlu0 %v140_v4, %s417_s25  ;;  %151 = vrot.lane.b32.xlu1 %v136_v56, %s418_s26 }
 0x117   :  { %153 = vrot.lane.b32.xlu0 %v137_v57, %s418_s26  ;;  %155 = vrot.lane.b32.xlu1 %v138_v63, %s418_s26 }
 0x11b   :  { %157 = vrot.lane.b32.xlu0 %v139_v0, %s418_s26  ;;  %159 = vrot.lane.b32.xlu1 %v140_v4, %s418_s26 }
 0x17d   :  { %v144_v5 = vpop.permute.xlu1 %143  ;;  %v142_v6 = vpop.permute.xlu0 %141 }
 0x181   :  { %v148_v8 = vpop.permute.xlu1 %147  ;;  %v146_v9 = vpop.permute.xlu0 %145 }
 0x185   :  { %v152_v10 = vpop.permute.xlu1 %151  ;;  %v150_v11 = vpop.permute.xlu0 %149 }
 0x186   :  { %v161_v12 = vadd.f32 %v152_v10, %v142_v6 }
 0x188   :  { %v166_v14 = vsel %vm504_vm8, %v161_v12, %v116_v52 }
 0x189   :  { %v156_v15 = vpop.permute.xlu1 %155  ;;  %v154_v16 = vpop.permute.xlu0 %153  ;;  %v186_v17 = vsel %vm529_vm11, %v166_v14, 0.0 }
 0x18a   :  { %v163_v18 = vadd.f32 %v156_v15, %v146_v9  ;;  %v162_v19 = vadd.f32 %v154_v16, %v144_v5  ;;  %191 = vrot.lane.b32.xlu0 %v186_v17, %s419_s27 }
 0x18c   :  { %v168_v20 = vsel %vm504_vm8, %v163_v18, %v118_v60  ;;  %v167_v21 = vsel %vm504_vm8, %v162_v19, %v117_v53 }
 0x18d   :  { %v160_v22 = vpop.permute.xlu1 %159  ;;  %v158_v23 = vpop.permute.xlu0 %157  ;;  %v188_v24 = vsel %vm529_vm11, %v168_v20, 0.0  ;;  %v187_v25 = vsel %vm529_vm11, %v167_v21, 0.0 }
 0x18e   :  { %v165_v26 = vadd.f32 %v160_v22, %v150_v11  ;;  %v164_v27 = vadd.f32 %v158_v23, %v148_v8  ;;  %195 = vrot.lane.b32.xlu0 %v188_v24, %s419_s27  ;;  %193 = vrot.lane.b32.xlu1 %v187_v25, %s419_s27 }
 0x190   :  { %v170_v28 = vsel %vm504_vm8, %v165_v26, %v120_v3  ;;  %v169_v29 = vsel %vm504_vm8, %v164_v27, %v119_v61 }
 0x191   :  { %v190_v30 = vsel %vm529_vm11, %v170_v28, 0.0  ;;  %v189_v31 = vsel %vm529_vm11, %v169_v29, 0.0 }
 0x192   :  { %199 = vrot.lane.b32.xlu0 %v190_v30, %s419_s27  ;;  %197 = vrot.lane.b32.xlu1 %v189_v31, %s419_s27 }
 0x196   :  { %203 = vrot.lane.b32.xlu0 %v187_v25, %s420_s28  ;;  %201 = vrot.lane.b32.xlu1 %v186_v17, %s420_s28 }
 0x19a   :  { %207 = vrot.lane.b32.xlu0 %v189_v31, %s420_s28  ;;  %205 = vrot.lane.b32.xlu1 %v188_v24, %s420_s28 }
 0x19e   :  { %209 = vrot.lane.b32.xlu1 %v190_v30, %s420_s28 }
 0x1fc   :  { %v192_v32 = vpop.permute.xlu0 %191 }
 0x200   :  { %v194_v33 = vpop.permute.xlu1 %193  ;;  %v196_v34 = vpop.permute.xlu0 %195 }
 0x204   :  { %v198_v36 = vpop.permute.xlu1 %197  ;;  %v200_v37 = vpop.permute.xlu0 %199 }
 0x208   :  { %v202_v38 = vpop.permute.xlu1 %201  ;;  %v204_v39 = vpop.permute.xlu0 %203 }
 0x209   :  { %v211_v40 = vadd.f32 %v202_v38, %v192_v32  ;;  %v212_v41 = vadd.f32 %v204_v39, %v194_v33 }
 0x20b   :  { %v216_v43 = vsel %vm529_vm11, %v211_v40, %v166_v14  ;;  %v217_v44 = vsel %vm529_vm11, %v212_v41, %v167_v21 }
 0x20c   :  { %v206_v45 = vpop.permute.xlu1 %205  ;;  %v208_v46 = vpop.permute.xlu0 %207  ;;  %v236_v47 = vsel %vm554_vm14, %v216_v43, 0.0  ;;  %v237_v48 = vsel %vm554_vm14, %v217_v44, 0.0 }
 0x20d   :  { %v213_v49 = vadd.f32 %v206_v45, %v196_v34  ;;  %v214_v50 = vadd.f32 %v208_v46, %v198_v36  ;;  %241 = vrot.lane.b32.xlu0 %v236_v47, %s421_s29  ;;  %243 = vrot.lane.b32.xlu1 %v237_v48, %s421_s29 }
 0x20f   :  { %v218_v51 = vsel %vm529_vm11, %v213_v49, %v168_v20  ;;  %v219_v52 = vsel %vm529_vm11, %v214_v50, %v169_v29 }
 0x210   :  { %v210_v53 = vpop.permute.xlu1 %209  ;;  %v238_v54 = vsel %vm554_vm14, %v218_v51, 0.0  ;;  %v239_v55 = vsel %vm554_vm14, %v219_v52, 0.0 }
 0x211   :  { %v215_v56 = vadd.f32 %v210_v53, %v200_v37  ;;  %245 = vrot.lane.b32.xlu0 %v238_v54, %s421_s29  ;;  %247 = vrot.lane.b32.xlu1 %v239_v55, %s421_s29 }
 0x213   :  { %v220_v57 = vsel %vm529_vm11, %v215_v56, %v170_v28 }
 0x214   :  { %v240_v58 = vsel %vm554_vm14, %v220_v57, 0.0 }
 0x215   :  { %249 = vrot.lane.b32.xlu0 %v240_v58, %s421_s29  ;;  %251 = vrot.lane.b32.xlu1 %v236_v47, %s422_s30 }
 0x219   :  { %253 = vrot.lane.b32.xlu0 %v237_v48, %s422_s30  ;;  %255 = vrot.lane.b32.xlu1 %v238_v54, %s422_s30 }
 0x21d   :  { %257 = vrot.lane.b32.xlu0 %v239_v55, %s422_s30  ;;  %259 = vrot.lane.b32.xlu1 %v240_v58, %s422_s30  ;;  %v376_v58 = vld [vmem:[%s726_s2] sm:$0xff] }
 0x27f   :  { %v244_v59 = vpop.permute.xlu1 %243  ;;  %v242_v60 = vpop.permute.xlu0 %241 }
 0x283   :  { %v248_v61 = vpop.permute.xlu1 %247  ;;  %v246_v62 = vpop.permute.xlu0 %245 }
 0x287   :  { %v252_v63 = vpop.permute.xlu1 %251  ;;  %v250_v0 = vpop.permute.xlu0 %249 }
 0x288   :  { %v261_v3 = vadd.f32 %v252_v63, %v242_v60 }
 0x28a   :  { %v586_v4 = vsel %vm554_vm14, %v261_v3, %v216_v43 }
 0x28b   :  { %v256_v5 = vpop.permute.xlu1 %255  ;;  %v254_v6 = vpop.permute.xlu0 %253  ;;  %v286_v7 = vsel %vm580_vm1, %v586_v4, 0.0 }
 0x28c   :  { %v263_v8 = vadd.f32 %v256_v5, %v246_v62  ;;  %v262_v9 = vadd.f32 %v254_v6, %v244_v59  ;;  %291 = vrot.lane.b32.xlu0 %v286_v7, %s423_s4  ;;  %v368_v62 = vld [vmem:[%s725_s1 + $0x10] sm:$0xff]  ;;  %v367_v5 = vld [vmem:[%s725_s1 + $0x8] sm:$0xff] }
 0x28d   :  { %v377_v6 = vld [vmem:[%s726_s2 + $0x8] sm:$0xff] }
 0x28e   :  { %v594_v1 = vsel %vm554_vm14, %v263_v8, %v218_v51  ;;  %v598_v10 = vsel %vm554_vm14, %v262_v9, %v217_v44 }
 0x28f   :  { %v260_v11 = vpop.permute.xlu1 %259  ;;  %v258_v12 = vpop.permute.xlu0 %257  ;;  %v288_v13 = vsel %vm580_vm1, %v594_v1, 0.0  ;;  %v287_v14 = vsel %vm580_vm1, %v598_v10, 0.0 }
 0x290   :  { %v265_v15 = vadd.f32 %v260_v11, %v250_v0  ;;  %v264_v16 = vadd.f32 %v258_v12, %v248_v61  ;;  %295 = vrot.lane.b32.xlu0 %v288_v13, %s423_s4  ;;  %293 = vrot.lane.b32.xlu1 %v287_v14, %s423_s4 }
 0x292   :  { %v610_v17 = vsel %vm554_vm14, %v265_v15, %v220_v57  ;;  %v614_v18 = vsel %vm554_vm14, %v264_v16, %v219_v52  ;;  %v366_v57 = vld [vmem:[%s725_s1] sm:$0xff] }
 0x293   :  { %v290_v19 = vsel %vm580_vm1, %v610_v17, 0.0  ;;  %v289_v20 = vsel %vm580_vm1, %v614_v18, 0.0  ;;  %v371_v61 = vmul.f32 %v366_v57, %v586_v4  ;;  %v370_v15 = vld [vmem:[%s725_s1 + $0x20] sm:$0xff] }
 0x294   :  { %299 = vrot.lane.b32.xlu0 %v290_v19, %s423_s4  ;;  %297 = vrot.lane.b32.xlu1 %v289_v20, %s423_s4 }
 0x298   :  { %303 = vrot.lane.b32.xlu0 %v287_v14, %s424_s5  ;;  %301 = vrot.lane.b32.xlu1 %v286_v7, %s424_s5  ;;  %v372_v14 = vmul.f32 %v367_v5, %v598_v10 }
 0x29c   :  { %307 = vrot.lane.b32.xlu0 %v289_v20, %s424_s5  ;;  %305 = vrot.lane.b32.xlu1 %v288_v13, %s424_s5  ;;  %v373_v13 = vmul.f32 %v368_v62, %v594_v1 }
 0x2a0   :  { %309 = vrot.lane.b32.xlu1 %v290_v19, %s424_s5 }
 0x2fe   :  { %v292_v21 = vpop.permute.xlu0 %291 }
 0x302   :  { %v294_v22 = vpop.permute.xlu1 %293  ;;  %v296_v23 = vpop.permute.xlu0 %295 }
 0x306   :  { %v298_v24 = vpop.permute.xlu1 %297  ;;  %v300_v25 = vpop.permute.xlu0 %299 }
 0x30a   :  { %v302_v26 = vpop.permute.xlu1 %301  ;;  %v304_v27 = vpop.permute.xlu0 %303 }
 0x30b   :  { %v311_v28 = vadd.f32 %v302_v26, %v292_v21  ;;  %v312_v29 = vadd.f32 %v304_v27, %v294_v22  ;;  %v369_v22 = vld [vmem:[%s725_s1 + $0x18] sm:$0xff] }
 0x30d   :  { %v316_v30 = vsel %vm580_vm1, %v311_v28, %v586_v4  ;;  %v317_v31 = vsel %vm580_vm1, %v312_v29, %v598_v10  ;;  %v378_v4 = vld [vmem:[%s726_s2 + $0x10] sm:$0xff]  ;;  %v375_v29 = vmul.f32 %v370_v15, %v610_v17 }
 0x30e   :  { %v306_v32 = vpop.permute.xlu1 %305  ;;  %321 = vrot.lane.b32.xlu0 %v316_v30, %s425_s6  ;;  %323 = vrot.lane.b32.xlu1 %v317_v31, %s425_s6  ;;  %v308_v33 = vpop.permute.xlu0 %307  ;;  %v374_v30 = vmul.f32 %v369_v22, %v614_v18 }
 0x30f   :  { %v313_v34 = vadd.f32 %v306_v32, %v296_v23  ;;  %v314_v35 = vadd.f32 %v308_v33, %v298_v24  ;;  %v380_v23 = vld [vmem:[%s726_s2 + $0x20] sm:$0xff] }
 0x311   :  { %v318_v36 = vsel %vm580_vm1, %v313_v34, %v594_v1  ;;  %v319_v37 = vsel %vm580_vm1, %v314_v35, %v614_v18  ;;  %v379_v1 = vld [vmem:[%s726_s2 + $0x18] sm:$0xff] }
 0x312   :  { %v310_v38 = vpop.permute.xlu1 %309  ;;  %325 = vrot.lane.b32.xlu0 %v318_v36, %s425_s6  ;;  %327 = vrot.lane.b32.xlu1 %v319_v37, %s425_s6 }
 0x313   :  { %v315_v39 = vadd.f32 %v310_v38, %v300_v25 }
 0x315   :  { %v320_v40 = vsel %vm580_vm1, %v315_v39, %v610_v17 }
 0x316   :  { %329 = vrot.lane.b32.xlu0 %v320_v40, %s425_s6 }
 0x380   :  { %v324_v41 = vpop.permute.xlu1 %323  ;;  %v322_v42 = vpop.permute.xlu0 %321 }
 0x381   :  { %v332_v43 = vsel %vm580_vm1, %v324_v41, 0.0  ;;  %v331_v44 = vsel %vm580_vm1, %v322_v42, 0.0 }
 0x382   :  { %338 = vrot.lane.b32.xlu0 %v332_v43, %s423_s4  ;;  %336 = vrot.lane.b32.xlu1 %v331_v44, %s423_s4 }
 0x384   :  { %v328_v45 = vpop.permute.xlu1 %327  ;;  %v326_v46 = vpop.permute.xlu0 %325 }
 0x385   :  { %v334_v47 = vsel %vm580_vm1, %v328_v45, 0.0  ;;  %v333_v48 = vsel %vm580_vm1, %v326_v46, 0.0 }
 0x386   :  { %342 = vrot.lane.b32.xlu0 %v334_v47, %s423_s4  ;;  %340 = vrot.lane.b32.xlu1 %v333_v48, %s423_s4 }
 0x388   :  { %v330_v49 = vpop.permute.xlu0 %329 }
 0x389   :  { %v335_v50 = vsel %vm580_vm1, %v330_v49, 0.0 }
 0x38a   :  { %346 = vrot.lane.b32.xlu0 %v331_v44, %s424_s5  ;;  %344 = vrot.lane.b32.xlu1 %v335_v50, %s423_s4 }
 0x38e   :  { %350 = vrot.lane.b32.xlu0 %v333_v48, %s424_s5  ;;  %348 = vrot.lane.b32.xlu1 %v332_v43, %s424_s5 }
 0x392   :  { %354 = vrot.lane.b32.xlu0 %v335_v50, %s424_s5  ;;  %352 = vrot.lane.b32.xlu1 %v334_v47, %s424_s5 }
 0x3f4   :  { %v337_v51 = vpop.permute.xlu1 %336  ;;  %v339_v52 = vpop.permute.xlu0 %338 }
 0x3f8   :  { %v341_v53 = vpop.permute.xlu1 %340  ;;  %v343_v54 = vpop.permute.xlu0 %342 }
 0x3fc   :  { %v345_v55 = vpop.permute.xlu1 %344  ;;  %v347_v56 = vpop.permute.xlu0 %346 }
 0x3fd   :  { %v356_v59 = vadd.f32 %v347_v56, %v337_v51 }
 0x3ff   :  { %v361_v60 = vsel %vm580_vm1, %v356_v59, %v322_v42 }
 0x400   :  { %v381_v63 = vmul.f32 %v376_v58, %v361_v60  ;;  %v349_v0 = vpop.permute.xlu1 %348  ;;  %v351_v3 = vpop.permute.xlu0 %350 }
 0x401   :  { %v357_v7 = vadd.f32 %v349_v0, %v339_v52  ;;  %v358_v8 = vadd.f32 %v351_v3, %v341_v53 }
 0x402   :  { %v386_v9 = vadd.f32 %v381_v63, %v371_v61 }
 0x403   :  { %v362_v11 = vsel %vm580_vm1, %v357_v7, %v324_v41  ;;  %v363_v12 = vsel %vm580_vm1, %v358_v8, %v326_v46 }
 0x404   :  { %391 = vst [vmem:[%s727_s3] sm:$0xff] %v386_v9  ;;  %v382_v16 = vmul.f32 %v377_v6, %v362_v11  ;;  %v383_v19 = vmul.f32 %v378_v4, %v363_v12  ;;  %v353_v20 = vpop.permute.xlu1 %352  ;;  %v355_v21 = vpop.permute.xlu0 %354 }
 0x405   :  { %v359_v10 = vadd.f32 %v353_v20, %v343_v54  ;;  %v360_v24 = vadd.f32 %v355_v21, %v345_v55 }
 0x406   :  { %v387_v25 = vadd.f32 %v382_v16, %v372_v14  ;;  %v388_v26 = vadd.f32 %v383_v19, %v373_v13 }
 0x407   :  { %v364_v27 = vsel %vm580_vm1, %v359_v10, %v328_v45  ;;  %v365_v28 = vsel %vm580_vm1, %v360_v24, %v330_v49 }
 0x408   :  { %392 = vst [vmem:[%s727_s3 + $0x8] sm:$0xff] %v387_v25  ;;  %393 = vst [vmem:[%s727_s3 + $0x10] sm:$0xff] %v388_v26  ;;  %v384_v31 = vmul.f32 %v379_v1, %v364_v27  ;;  %v385_v32 = vmul.f32 %v380_v23, %v365_v28 }
 0x40a   :  { %v389_v33 = vadd.f32 %v384_v31, %v374_v30  ;;  %v390_v34 = vadd.f32 %v385_v32, %v375_v29 }
 0x40c   :  { %394 = vst [vmem:[%s727_s3 + $0x18] sm:$0xff] %v389_v33  ;;  %395 = vst [vmem:[%s727_s3 + $0x20] sm:$0xff] %v390_v34 }

</bundles_post_ra>
